<compile_context>
chip_gen: v7x
topology: tpu7x:2x2x1
jax: 0.10.0
libtpu: 0.0.40
codegen_flags: <defaults>
</compile_context>

<pallas_src>
import jax
import jax.numpy as jnp
from jax import lax
from jax.experimental import pallas as pl
from jax.experimental.pallas import tpu as pltpu  # noqa: F401  (TPU backend)

# ---- model dimensions --------------------------------------------------------
B = 2            # batch
C_IN = 4         # input channels
H = W = 16       # spatial
C_FEAT = 32      # backbone feature channels
E = 16           # embedding dim
K = 3            # conv kernel size
KKC = K * K * C_IN        # 36  (im2col contraction depth)
KKC_AUG = KKC + 1         # 37  (+ ones row for folded conv bias)
HW = H * W                # 256 (spatial columns per batch, lane axis)


# -----------------------------------------------------------------------------
# Fused kernel: conv (im2col matmul, bias folded) + ReLU + global avg pool
#               (lane reduce, scale folded into head) + linear head + L2 norm.
#               No grid, single invocation, everything stays in vregs.
# -----------------------------------------------------------------------------
def metric_kernel(patches_ref, wconv_ref, whead_ref, bhead_ref, o_ref):
    # patches_ref: (B, KKC_AUG, HW)  im2col patches, last row per batch = ones
    # wconv_ref:   (C_FEAT, KKC_AUG) flattened conv weight, last col = b_conv
    # whead_ref:   (C_FEAT, E)       head weight, 1/(H*W) pool scale pre-folded
    # bhead_ref:   (1, E)
    # o_ref:       (B, E)
    wconv = wconv_ref[...]
    whead = whead_ref[...]

    z_rows = []
    for b in range(B):  # B = 2, unrolled at trace time
        # Backbone conv (+bias) as one lane-dense MXU matmul: (32,37)@(37,256).
        acc = jnp.dot(wconv, patches_ref[b],
                      preferred_element_type=jnp.float32)          # (C_FEAT, HW)
        acc = jnp.maximum(acc, 0.0)                                  # ReLU (VPU)
        # Global sum pool: XLU lane reduce of the lane-dense activation.
        f_b = jnp.sum(acc, axis=-1, keepdims=True)                   # (C_FEAT, 1)
        # Head contraction on tiny operands: broadcast-mul + sublane reduce.
        z_rows.append(jnp.sum(f_b * whead, axis=0, keepdims=True))   # (1, E)

    z = jnp.concatenate(z_rows, axis=0) + bhead_ref[...]             # (B, E)
    # L2 normalization via EUP rsqrt (own bundle slot) instead of sqrt+divide.
    z = z * lax.rsqrt(jnp.sum(z * z, axis=-1, keepdims=True) + 1e-12)
    o_ref[...] = z.astype(o_ref.dtype)


# -----------------------------------------------------------------------------
# Forward: wrapper does only layout plumbing — a single pad + concat + reshape
# on the activations (no transposes) and tiny weight-side prep (in a real
# deployment the weight prep would be pre-baked constants).
# -----------------------------------------------------------------------------
def metric_model_forward(x_nchw, params):
    # im2col directly from NCHW: channel-axis concat of the 9 shifted slices
    # (+ a ones slice for the folded conv bias). Rows per batch are ordered
    # (ky, kx, c) to match w_conv.reshape(KKC, C_FEAT); columns are (h, w).
    x_pad = jnp.pad(x_nchw, ((0, 0), (0, 0), (1, 1), (1, 1)))        # (B,C,H+2,W+2)
    slices = [x_pad[:, :, ky:ky + H, kx:kx + W]
              for ky in range(K) for kx in range(K)]
    ones_row = jnp.ones((B, 1, H, W), x_nchw.dtype)
    patches = jnp.concatenate(slices + [ones_row], axis=1)           # (B, 37, H, W)
    patches = patches.reshape(B, KKC_AUG, HW)                        # (B, 37, 256)

    # Tiny weight-side prep: fold conv bias as an extra column, fold the
    # 1/(H*W) average-pool scale into the head weight.
    wconv_aug = jnp.concatenate(
        [params["w_conv"].reshape(KKC, C_FEAT),
         params["b_conv"].reshape(1, C_FEAT)], axis=0).T             # (C_FEAT, 37)
    whead_scaled = params["w_head"] * (1.0 / HW)                     # (C_FEAT, E)
    bhead = params["b_head"].reshape(1, E)

    cost = pl.CostEstimate(flops=1_250_000, transcendentals=2,
                           bytes_accessed=83_000)

    return pl.pallas_call(
        metric_kernel,
        out_shape=jax.ShapeDtypeStruct((B, E), jnp.float32),
        in_specs=[
            pl.BlockSpec((B, KKC_AUG, HW), lambda: (0, 0, 0)),
            pl.BlockSpec((C_FEAT, KKC_AUG), lambda: (0, 0)),
            pl.BlockSpec((C_FEAT, E), lambda: (0, 0)),
            pl.BlockSpec((1, E), lambda: (0, 0)),
        ],
        out_specs=pl.BlockSpec((B, E), lambda: (0, 0)),
        cost_estimate=cost,
    )(patches, wconv_aug, whead_scaled, bhead)


forward_jit = jax.jit(metric_model_forward)


# -----------------------------------------------------------------------------
# Pure-JAX reference for correctness checking.
# -----------------------------------------------------------------------------
def reference_forward(x_nchw, params):
    w_oihw = jnp.transpose(params["w_conv"], (3, 2, 0, 1))   # HWIO -> OIHW
    y = lax.conv_general_dilated(
        x_nchw, w_oihw, window_strides=(1, 1), padding=((1, 1), (1, 1)),
        dimension_numbers=("NCHW", "OIHW", "NCHW"))
    y = y + params["b_conv"].reshape(1, C_FEAT, 1, 1)
    y = jnp.maximum(y, 0.0)
    feats = jnp.mean(y, axis=(2, 3))                         # (B, C_FEAT)
    z = feats @ params["w_head"] + params["b_head"]
    return z / jnp.sqrt(jnp.sum(z * z, axis=-1, keepdims=True) + 1e-12)


if __name__ == "__main__":
    key = jax.random.PRNGKey(0)
    k_x, k_wc, k_bc, k_wh, k_bh = jax.random.split(key, 5)

    x = jax.random.normal(k_x, (B, C_IN, H, W), jnp.float32)   # NCHW input

    params = {
        "w_conv": 0.1 * jax.random.normal(k_wc, (K, K, C_IN, C_FEAT), jnp.float32),
        "b_conv": 0.1 * jax.random.normal(k_bc, (1, C_FEAT), jnp.float32),
        "w_head": 0.1 * jax.random.normal(k_wh, (C_FEAT, E), jnp.float32),
        "b_head": 0.1 * jax.random.normal(k_bh, (1, E), jnp.float32),
    }

    out = forward_jit(x, params)
    out = jax.block_until_ready(out)

    ref = reference_forward(x, params)
    assert out.shape == (B, E), out.shape
    assert jnp.allclose(out, ref, atol=1e-5, rtol=1e-5), (
        f"mismatch: max abs err = {jnp.max(jnp.abs(out - ref))}")

    print("KERNEL_OK")
</pallas_src>

<mosaic_0001>
module attributes {stable_mosaic.version = 11 : i64} {
  func.func @metric_kernel(%arg0: memref<2x37x256xf32, #tpu.memory_space<vmem>>, %arg1: memref<32x37xf32, #tpu.memory_space<vmem>>, %arg2: memref<32x16xf32, #tpu.memory_space<vmem>>, %arg3: memref<1x16xf32, #tpu.memory_space<vmem>>, %arg4: memref<2x16xf32, #tpu.memory_space<vmem>>) attributes {dimension_semantics = [], scalar_prefetch = 0 : i64, scratch_operands = 0 : i64, tpu.core_type = #tpu.core_type<tc>} {
    %c0 = arith.constant 0 : index
    %c0_0 = arith.constant 0 : index
    %0 = vector.load %arg1[%c0, %c0_0] : memref<32x37xf32, #tpu.memory_space<vmem>>, vector<32x37xf32>
    %c0_1 = arith.constant 0 : index
    %c0_2 = arith.constant 0 : index
    %1 = vector.load %arg2[%c0_1, %c0_2] : memref<32x16xf32, #tpu.memory_space<vmem>>, vector<32x16xf32>
    %c0_3 = arith.constant 0 : index
    %c0_4 = arith.constant 0 : index
    %c0_5 = arith.constant 0 : index
    %2 = vector.load %arg0[%c0_3, %c0_4, %c0_5] : memref<2x37x256xf32, #tpu.memory_space<vmem>>, vector<1x37x256xf32>
    %3 = vector.shape_cast %2 : vector<1x37x256xf32> to vector<37x256xf32>
    %cst = arith.constant dense<0.000000e+00> : vector<32x256xf32>
    %4 = tpu.matmul %0, %3, %cst {dimension_numbers = #tpu.dot_dimension_numbers<[1], [0], [0], [1], [0, 0, 1, 1], [], []>} : vector<32x37xf32>, vector<37x256xf32>, vector<32x256xf32> -> vector<32x256xf32>
    %cst_6 = arith.constant 0.000000e+00 : f32
    %5 = vector.broadcast %cst_6 : f32 to vector<32x256xf32>
    %6 = arith.maximumf %4, %5 : vector<32x256xf32>
    %cst_7 = arith.constant dense<0.000000e+00> : vector<32xf32>
    %7 = vector.multi_reduction <add>, %6, %cst_7 [1] : vector<32x256xf32> to vector<32xf32>
    %8 = vector.shape_cast %7 : vector<32xf32> to vector<32x1xf32>
    %9 = vector.broadcast %8 : vector<32x1xf32> to vector<32x16xf32>
    %10 = arith.mulf %9, %1 : vector<32x16xf32>
    %cst_8 = arith.constant dense<0.000000e+00> : vector<16xf32>
    %11 = vector.multi_reduction <add>, %10, %cst_8 [0] : vector<32x16xf32> to vector<16xf32>
    %12 = vector.shape_cast %11 : vector<16xf32> to vector<1x16xf32>
    %c1 = arith.constant 1 : index
    %c0_9 = arith.constant 0 : index
    %c0_10 = arith.constant 0 : index
    %13 = vector.load %arg0[%c1, %c0_9, %c0_10] : memref<2x37x256xf32, #tpu.memory_space<vmem>>, vector<1x37x256xf32>
    %14 = vector.shape_cast %13 : vector<1x37x256xf32> to vector<37x256xf32>
    %cst_11 = arith.constant dense<0.000000e+00> : vector<32x256xf32>
    %15 = tpu.matmul %0, %14, %cst_11 {dimension_numbers = #tpu.dot_dimension_numbers<[1], [0], [0], [1], [0, 0, 1, 1], [], []>} : vector<32x37xf32>, vector<37x256xf32>, vector<32x256xf32> -> vector<32x256xf32>
    %cst_12 = arith.constant 0.000000e+00 : f32
    %16 = vector.broadcast %cst_12 : f32 to vector<32x256xf32>
    %17 = arith.maximumf %15, %16 : vector<32x256xf32>
    %cst_13 = arith.constant dense<0.000000e+00> : vector<32xf32>
    %18 = vector.multi_reduction <add>, %17, %cst_13 [1] : vector<32x256xf32> to vector<32xf32>
    %19 = vector.shape_cast %18 : vector<32xf32> to vector<32x1xf32>
    %20 = vector.broadcast %19 : vector<32x1xf32> to vector<32x16xf32>
    %21 = arith.mulf %20, %1 : vector<32x16xf32>
    %cst_14 = arith.constant dense<0.000000e+00> : vector<16xf32>
    %22 = vector.multi_reduction <add>, %21, %cst_14 [0] : vector<32x16xf32> to vector<16xf32>
    %23 = vector.shape_cast %22 : vector<16xf32> to vector<1x16xf32>
    %24 = tpu.concatenate %12, %23 in 0 : vector<1x16xf32>, vector<1x16xf32> -> vector<2x16xf32>
    %c0_15 = arith.constant 0 : index
    %c0_16 = arith.constant 0 : index
    %25 = vector.load %arg3[%c0_15, %c0_16] : memref<1x16xf32, #tpu.memory_space<vmem>>, vector<1x16xf32>
    %26 = vector.broadcast %25 : vector<1x16xf32> to vector<2x16xf32>
    %27 = arith.addf %24, %26 : vector<2x16xf32>
    %28 = arith.mulf %27, %27 : vector<2x16xf32>
    %cst_17 = arith.constant dense<0.000000e+00> : vector<2xf32>
    %29 = vector.multi_reduction <add>, %28, %cst_17 [1] : vector<2x16xf32> to vector<2xf32>
    %30 = vector.shape_cast %29 : vector<2xf32> to vector<2x1xf32>
    %cst_18 = arith.constant 9.99999996E-13 : f32
    %31 = vector.broadcast %cst_18 : f32 to vector<2x1xf32>
    %32 = arith.addf %30, %31 : vector<2x1xf32>
    %33 = math.rsqrt %32 : vector<2x1xf32>
    %34 = vector.broadcast %33 : vector<2x1xf32> to vector<2x16xf32>
    %35 = arith.mulf %27, %34 : vector<2x16xf32>
    %c0_19 = arith.constant 0 : index
    %c0_20 = arith.constant 0 : index
    %36 = vector.load %arg4[%c0_19, %c0_20] : memref<2x16xf32, #tpu.memory_space<vmem>>, vector<2x16xf32>
    tpu.vector_store %arg4[%c0_19, %c0_20], %35 {strides = array<i32>} : memref<2x16xf32, #tpu.memory_space<vmem>>, vector<2x16xf32>,
    return
  }
}

</mosaic_0001>

<bundles_post_ra>
// kernel: metric_model_forward.1
= control target key start
LH: loop header
LB: loop body
LE: loop exit
PB: predicated region body
PF: predicated region fallthrough
CT: control target
= control target key end

     0   :  { %v426_v7 = vmov 0.0   ;;  %vm49_vm0 = vcmask 1044480   ;;  %s568_s0 = inlined_call_operand.vmem [shape: f32[2,37,256], index: 0, kind: input, shape index: {}]   ;;  %s569_s1 = inlined_call_operand.vmem [shape: f32[32,37], index: 1, kind: input, shape index: {}]   ;;  %s570_s2 = inlined_call_operand.vmem [shape: f32[32,16], index: 2, kind: input, shape index: {}]   ;;  %s571_s3 = inlined_call_operand.vmem [shape: f32[1,16], index: 3, kind: input, shape index: {}]   ;;  %s572_s4 = inlined_call_operand.hbm [shape: f32[2,16], index: 4, kind: output, shape index: {}]  }
   0x1   :  { %v27_v0 = vld [vmem:[%s568_s0 + $0x8] sm:$0xff]  ;;  %v29_v1 = vld [vmem:[%s568_s0 + $0x18] sm:$0xff]  ;;  %v26_v5 = vld [vmem:[%s568_s0] sm:$0xff]  ;;  %120 = vmatprep.mubr.f32.mxu0 %v426_v7  ;;  %264 = vmatprep.mubr.f32.mxu1 %v426_v7 }
   0x2   :  { %v366_v2 = vld [vmem:[%s568_s0 + $0x58] sm:$0xff]  ;;  %v382_v3 = vpack.c.bf16 %v29_v1, %v27_v0  ;;  %v368_v4 = vld [vmem:[%s568_s0 + $0x68] sm:$0xff]  ;;  %v28_v6 = vld [vmem:[%s568_s0 + $0x10] sm:$0xff] }
   0x3   :  { %v390_v8 = vpack.c.bf16 %v368_v4, %v366_v2  ;;  %v384_v9 = vpack.c.bf16 %v28_v6, %v26_v5  ;;  %v365_v10 = vld [vmem:[%s568_s0 + $0x50] sm:$0xff]  ;;  %v367_v11 = vld [vmem:[%s568_s0 + $0x60] sm:$0xff]  ;;  %v31_v12 = vld [vmem:[%s568_s0 + $0x28] sm:$0xff] }
   0x4   :  { %383 = vmatprep.subr.bf16.mxu0 %v382_v3  ;;  %v392_v13 = vpack.c.bf16 %v367_v11, %v365_v10  ;;  %v33_v14 = vld [vmem:[%s568_s0 + $0x38] sm:$0xff]  ;;  %v372_v16 = vld [vmem:[%s568_s0 + $0x88] sm:$0xff]  ;;  %v30_v19 = vld [vmem:[%s568_s0 + $0x20] sm:$0xff] }
   0x5   :  { %v370_v15 = vld [vmem:[%s568_s0 + $0x78] sm:$0xff]  ;;  %391 = vmatprep.subr.bf16.mxu1 %v390_v8  ;;  %385 = vmatpush1.bf16.msra.mxu0 %v384_v9  ;;  %v386_v17 = vpack.c.bf16 %v33_v14, %v31_v12  ;;  %v32_v20 = vld [vmem:[%s568_s0 + $0x30] sm:$0xff]  ;;  %v371_v23 = vld [vmem:[%s568_s0 + $0x80] sm:$0xff] }
   0x6   :  { %v394_v18 = vpack.c.bf16 %v372_v16, %v370_v15  ;;  %v369_v21 = vld [vmem:[%s568_s0 + $0x70] sm:$0xff]  ;;  %393 = vmatpush1.bf16.msra.mxu1 %v392_v13  ;;  %v388_v22 = vpack.c.bf16 %v32_v20, %v30_v19  ;;  %v35_v25 = vld [vmem:[%s568_s0 + $0x48] sm:$0x1f]  ;;  %v374_v26 = vld [vmem:[%s568_s0 + $0x98] sm:$0x1f] }
   0x7   :  { %387 = vmatprep.subr.bf16.mxu0 %v386_v17  ;;  %v396_v24 = vpack.c.bf16 %v371_v23, %v369_v21 }
   0x8   :  { %395 = vmatprep.subr.bf16.mxu1 %v394_v18 }
   0x9   :  { %389 = vmatpush1.bf16.msra.mxu0 %v388_v22 }
   0xa   :  { %9 = vsyncpa [#allocation3], 0  ;;  %397 = vmatpush1.bf16.msra.mxu1 %v396_v24  ;;  %359 = vmatprep.subr.msk.mxu0 %vm49_vm0, %v35_v25  ;;  %v34_v27 = vld [vmem:[%s568_s0 + $0x40] sm:$0x1f]  ;;  %v373_v28 = vld [vmem:[%s568_s0 + $0x90] sm:$0x1f] }
   0xb   :  { %375 = vmatprep.subr.msk.mxu1 %vm49_vm0, %v374_v26  ;;  %v18_v29 = vld [vmem:[%s569_s1] sm:$0xff]  ;;  %vm36_vm1 = vcmask 302080   ;;  %v19_v30 = vld [vmem:[%s569_s1 + $0x8] sm:$0xff]  ;;  %v20_v31 = vld [vmem:[%s569_s1 + $0x10] sm:$0xff]  ;;  %vm169_vm2 = vcmask 130048   ;;  %vm326_vm3 = vcmask 1040384  }
   0xc   :  { %v21_v32 = vld [vmem:[%s569_s1 + $0x18] sm:$0xff]  ;;  %v23_v11 = vld [vmem:[%s570_s2 + $0x8] sm:$0xff]  ;;  %v22_v12 = vld [vmem:[%s570_s2] sm:$0xff]  ;;  %vm337_vm4 = vcmask 123904   ;;  %s427_s18 = smov [#allocation2]  }
   0xd   :  { %360 = vmatpush1.msk.msra.mxu0 %vm49_vm0, %v34_v27  ;;  %v24_v17 = vld [vmem:[%s570_s2 + $0x10] sm:$0xff]  ;;  %v25_v26 = vld [vmem:[%s570_s2 + $0x18] sm:$0xff]  ;;  %s351_s19 = sshll.u32 %s427_s18, 4  ;;  %s352_s19 = int_to_ptr.vmem [resolvable:$true] %s351_s19 }
   0xe   :  { %376 = vmatpush1.msk.msra.mxu1 %vm49_vm0, %v373_v28  ;;  %361 = vmatmul.mubr.msk.f32.vlgmr.msra.gmra.mrb[0].mxu0 %vm36_vm1, %v18_v29  ;;  %s402_s20 = scalar_lea.vmem %s352_s19, 32  ;;  %p407_p1 = scmp.lt.s32.totalorder %s352_s19, %s352_s19 }
   0xf   :  { %377 = vmatmul.mubr.msk.f32.vlgmr.msra.gmra.mrb[0].mxu1 %vm36_vm1, %v18_v29  ;;  %126 = vmatprep.mubr.f32.mxu0 %v426_v7  ;;  %p403_p0 = scmp.ne.s32.totalorder %s352_s19, %s402_s20  ;;  %p408_p2 = scmp.lt.s32.totalorder %s402_s20, %s402_s20 }
  0x10   :  { %270 = vmatprep.mubr.f32.mxu1 %v426_v7 }
  0x11   :  { %p409_p3 = por %p408_p2, %p407_p1 }
  0x12   :  { %362 = vmatmul.mubr.msk.f32.gmra.mrb[2].mxu0 %vm36_vm1, %v19_v30 }
  0x13   :  { %378 = vmatmul.mubr.msk.f32.gmra.mrb[2].mxu1 %vm36_vm1, %v19_v30  ;;  %132 = vmatprep.mubr.f32.mxu0 %v426_v7  ;;  %p410_p4 = pnand %p409_p3, %p403_p0 }
  0x14   :  { %276 = vmatprep.mubr.f32.mxu1 %v426_v7 }
  0x16   :  { %363 = vmatmul.mubr.msk.f32.gmra.mrb[4].mxu0 %vm36_vm1, %v20_v31 }
  0x17   :  { %379 = vmatmul.mubr.msk.f32.gmra.mrb[4].mxu1 %vm36_vm1, %v20_v31  ;;  %138 = vmatprep.mubr.f32.mxu0 %v426_v7 }
  0x18   :  { %282 = vmatprep.mubr.f32.mxu1 %v426_v7 }
  0x1a   :  { %364 = vmatmul.mubr.msk.f32.gmra.mrb[6].mxu0 %vm36_vm1, %v21_v32 }
  0x1b   :  { %380 = vmatmul.mubr.msk.f32.gmra.mrb[6].mxu1 %vm36_vm1, %v21_v32 }
  0xe1   :  { %v122_v33 = vpop.f32.mrb[0].mxu0 }
  0xe2   :  { %v145_v34 = vmax.f32 %v122_v33, 0.0  ;;  %v266_v35 = vpop.f32.mrb[0].mxu1  ;;  %v124_v36 = vpop.f32.mrb[1].mxu0 }
  0xe3   :  { %v289_v37 = vmax.f32 %v266_v35, 0.0  ;;  %v146_v38 = vmax.f32 %v124_v36, 0.0  ;;  %v268_v39 = vpop.f32.mrb[1].mxu1 }
  0xe4   :  { %v290_v40 = vmax.f32 %v268_v39, 0.0 }
  0xe5   :  { %v128_v41 = vpop.f32.mrb[2].mxu0  ;;  %v153_v42 = vadd.f32 %v146_v38, %v145_v34 }
  0xe6   :  { %v147_v43 = vmax.f32 %v128_v41, 0.0  ;;  %v272_v44 = vpop.f32.mrb[2].mxu1  ;;  %v130_v45 = vpop.f32.mrb[3].mxu0  ;;  %v297_v46 = vadd.f32 %v290_v40, %v289_v37 }
  0xe7   :  { %v291_v47 = vmax.f32 %v272_v44, 0.0  ;;  %v148_v48 = vmax.f32 %v130_v45, 0.0  ;;  %v274_v49 = vpop.f32.mrb[3].mxu1  ;;  %154 = vadd.xlane.f32.xlu0 %v153_v42 }
  0xe8   :  { %v292_v50 = vmax.f32 %v274_v49, 0.0  ;;  %298 = vadd.xlane.f32.xlu1 %v297_v46 }
  0xe9   :  { %v134_v51 = vpop.f32.mrb[4].mxu0  ;;  %v156_v52 = vadd.f32 %v148_v48, %v147_v43 }
  0xea   :  { %v149_v53 = vmax.f32 %v134_v51, 0.0  ;;  %v278_v54 = vpop.f32.mrb[4].mxu1  ;;  %v136_v55 = vpop.f32.mrb[5].mxu0  ;;  %v300_v56 = vadd.f32 %v292_v50, %v291_v47 }
  0xeb   :  { %v293_v57 = vmax.f32 %v278_v54, 0.0  ;;  %v150_v58 = vmax.f32 %v136_v55, 0.0  ;;  %v280_v59 = vpop.f32.mrb[5].mxu1  ;;  %157 = vadd.xlane.f32.xlu0 %v156_v52  ;;  %v381_v55 = vld [vmem:[%s571_s3] ss:$0 sm:$0xff] }
  0xec   :  { %v294_v60 = vmax.f32 %v280_v59, 0.0  ;;  %301 = vadd.xlane.f32.xlu1 %v300_v56 }
  0xed   :  { %v140_v61 = vpop.f32.mrb[6].mxu0  ;;  %v159_v62 = vadd.f32 %v150_v58, %v149_v53 }
  0xee   :  { %v151_v63 = vmax.f32 %v140_v61, 0.0  ;;  %v284_v0 = vpop.f32.mrb[6].mxu1  ;;  %v142_v1 = vpop.f32.mrb[7].mxu0  ;;  %v303_v2 = vadd.f32 %v294_v60, %v293_v57 }
  0xef   :  { %v295_v3 = vmax.f32 %v284_v0, 0.0  ;;  %v152_v4 = vmax.f32 %v142_v1, 0.0  ;;  %v286_v5 = vpop.f32.mrb[7].mxu1  ;;  %160 = vadd.xlane.f32.xlu0 %v159_v62 }
  0xf0   :  { %v296_v6 = vmax.f32 %v286_v5, 0.0  ;;  %304 = vadd.xlane.f32.xlu1 %v303_v2 }
  0xf1   :  { %v162_v7 = vadd.f32 %v152_v4, %v151_v63 }
  0xf2   :  { %v306_v8 = vadd.f32 %v296_v6, %v295_v3 }
  0xf3   :  { %163 = vadd.xlane.f32.xlu0 %v162_v7 }
  0xf4   :  { %307 = vadd.xlane.f32.xlu1 %v306_v8 }
 0x174   :  { %v155_v9 = vpop.xlane.xlu0 %154 }
 0x175   :  { %v299_v10 = vpop.xlane.xlu1 %298  ;;  %v165_v18 = vmul.f32 %v155_v9, %v22_v12 }
 0x176   :  { %v309_v19 = vmul.f32 %v299_v10, %v22_v12 }
 0x177   :  { %v170_v27 = vsel %vm169_vm2, %v165_v18, 0.0 }
 0x178   :  { %v158_v13 = vpop.xlane.xlu0 %157  ;;  %v313_v29 = vsel %vm169_vm2, %v309_v19, 0.0 }
 0x179   :  { %v302_v14 = vpop.xlane.xlu1 %301  ;;  %v166_v15 = vmul.f32 %v158_v13, %v23_v11 }
 0x17a   :  { %v310_v16 = vmul.f32 %v302_v14, %v23_v11 }
 0x17b   :  { %v171_v21 = vsel %vm169_vm2, %v166_v15, 0.0 }
 0x17c   :  { %v161_v20 = vpop.xlane.xlu0 %160  ;;  %v314_v24 = vsel %vm169_vm2, %v310_v16, 0.0  ;;  %v172_v30 = vadd.f32 %v171_v21, %v170_v27 }
 0x17d   :  { %v305_v22 = vpop.xlane.xlu1 %304  ;;  %v167_v23 = vmul.f32 %v161_v20, %v24_v17  ;;  %v315_v33 = vadd.f32 %v314_v24, %v313_v29 }
 0x17e   :  { %v311_v25 = vmul.f32 %v305_v22, %v24_v17 }
 0x17f   :  { %v173_v28 = vsel %vm169_vm2, %v167_v23, 0.0 }
 0x180   :  { %v316_v31 = vsel %vm169_vm2, %v311_v25, 0.0  ;;  %v164_v32 = vpop.xlane.xlu0 %163  ;;  %v174_v36 = vadd.f32 %v173_v28, %v172_v30 }
 0x181   :  { %v308_v34 = vpop.xlane.xlu1 %307  ;;  %v168_v35 = vmul.f32 %v164_v32, %v25_v26  ;;  %v317_v38 = vadd.f32 %v316_v31, %v315_v33 }
 0x182   :  { %v312_v37 = vmul.f32 %v308_v34, %v25_v26 }
 0x183   :  { %v175_v39 = vsel %vm169_vm2, %v168_v35, 0.0 }
 0x184   :  { %v318_v40 = vsel %vm169_vm2, %v312_v37, 0.0  ;;  %v176_v41 = vadd.f32 %v175_v39, %v174_v36 }
 0x185   :  { %v319_v42 = vadd.f32 %v318_v40, %v317_v38 }
 0x186   :  { %v177_v43 = vrot.slane %v176_v41, 4 }
 0x187   :  { %v320_v44 = vrot.slane %v319_v42, 4 }
 0x188   :  { %v178_v45 = vadd.f32 %v177_v43, %v176_v41 }
 0x189   :  { %v321_v46 = vadd.f32 %v320_v44, %v319_v42 }
 0x18a   :  { %v179_v47 = vrot.slane %v178_v45, 2 }
 0x18b   :  { %v322_v48 = vrot.slane %v321_v46, 2 }
 0x18c   :  { %v180_v49 = vadd.f32 %v179_v47, %v178_v45 }
 0x18d   :  { %v323_v50 = vadd.f32 %v322_v48, %v321_v46 }
 0x18e   :  { %v181_v51 = vrot.slane %v180_v49, 1 }
 0x18f   :  { %v324_v52 = vrot.slane %v323_v50, 1 }
 0x190   :  { %v182_v53 = vadd.f32 %v181_v51, %v180_v49 }
 0x191   :  { %v325_v54 = vadd.f32 %v324_v52, %v323_v50 }
 0x193   :  { %v327_v56 = vsel %vm326_vm3, %v182_v53, %v325_v54 }
 0x194   :  { %v335_v57 = vadd.f32 %v381_v55, %v327_v56 }
 0x196   :  { %v336_v58 = vmul.f32 %v335_v57, %v335_v57 }
 0x198   :  { %v338_v59 = vsel %vm337_vm4, %v336_v58, 0.0 }
 0x199   :  { %339 = vadd.xlane.f32.xlu0 %v338_v59 }
 0x226   :  { %v340_v60 = vpop.xlane.xlu0 %339 }
 0x227   :  { %v341_v61 = vadd.f32 1e-12, %v340_v60 }
 0x229   :  { %400 = vrsqrt.f32 %v341_v61 }
 0x233   :  { %v401_v62 = vpop.eup %400 }
 0x234   :  { %v343_v63 = vmul.f32 %v401_v62, %v335_v57 }
 0x236   :  { %344 = vst.msk [vmem:[#allocation2] sm:$0x3] %vm337_vm4, %v343_v63 }
 0x237   :  { %413 = shalt.err (!%p410_p4)
}
 0x238   :  { %s414_s22 = scalar_lea.hbm %s572_s4, 32 }
 0x239   :  { %p415_p5 = scmp.ne.s32.totalorder %s572_s4, %s414_s22  ;;  %p418_p6 = scmp.lt.u32.totalorder %s414_s22, %s572_s4 }
 0x23b   :  { %p420_p7 = pnand %p418_p6, %p415_p5 }
 0x23d   :  { %423 = shalt.err (!%p420_p7)
}
 0x23e   :  { %354 = dma.vmem_to_hbm [thread:$0]  %s352_s19, 32, %s572_s4, [#allocation3]  }
 0x23f   :  { %424 = dma.done.wait [#allocation3], 32  }
 0x240   :  { %425 = vsyncadd [#allocation3], 4294967264 }
 0x241   :  { %358 = vsyncpa [#allocation3], 1 }

</bundles_post_ra>
